<compile_context>
chip_gen: v7x
topology: tpu7x:2x2x1
jax: 0.10.0
libtpu: 0.0.40
codegen_flags: <defaults>
</compile_context>

<pallas_src>
import functools

import jax
import jax.numpy as jnp
from jax.experimental import pallas as pl
from jax.experimental.pallas import tpu as pltpu

NUM_CLASSES = 10      # logical class count (softmax dim=1 in PyTorch)
LANE_PAD = 128        # packed class axis = one full lane width
NET2_OFFSET = 64      # net-2 classes live in lanes [64, 64+NUM_CLASSES)
BETA = 0.5


def _round_up(v, m):
    return ((v + m - 1) // m) * m


def _double_attacker_kernel(x_ref, w_ref, b_ref, o_ref, acc_ref,
                            *, num_classes, net2_offset, beta):
    k = pl.program_id(1)

    @pl.when(k == 0)
    def _init():
        acc_ref[...] = jnp.zeros_like(acc_ref)

    # Single fused matmul: both networks' class columns live in one weight tile.
    acc_ref[...] += jnp.dot(x_ref[...], w_ref[...],
                            preferred_element_type=jnp.float32)

    @pl.when(k == pl.num_programs(1) - 1)
    def _finalize():
        logits = acc_ref[...] + b_ref[...]                       # [tm, 128] f32

        # Lane masks built once, reused by both softmaxes.
        col = jax.lax.broadcasted_iota(jnp.int32, logits.shape, dimension=1)
        mask1 = col < num_classes
        mask2 = jnp.logical_and(col >= net2_offset,
                                col < net2_offset + num_classes)
        neg_inf = jnp.float32(-1e30)

        def masked_softmax(l, valid):
            l = jnp.where(valid, l, neg_inf)
            m = jnp.max(l, axis=-1, keepdims=True)
            e = jnp.where(valid, jnp.exp(l - m), 0.0)
            denom = jnp.sum(e, axis=-1, keepdims=True)
            return e * pl.reciprocal(denom, approx=False)

        s1 = masked_softmax(logits, mask1)                       # lanes 0..9
        s2 = masked_softmax(logits, mask2)                       # lanes 64..73
        # Realign net-2 probabilities onto lanes 0..9 (XLU rotation, cheap).
        s2 = pltpu.roll(s2, shift=net2_offset, axis=1)

        o_ref[...] = (((1.0 - beta) * s1 + beta * s2) * 0.5).astype(o_ref.dtype)


def double_net_attacker_pallas(x_nchw, w_packed, b_packed, beta=BETA,
                               *, tm=16, tk=512):
    """x_nchw: [B, C, H, W] f32; w_packed: [D, 128] bf16; b_packed: [1, 128] f32.
    Returns [B, NUM_CLASSES] f32."""
    B = x_nchw.shape[0]
    D = x_nchw.shape[1] * x_nchw.shape[2] * x_nchw.shape[3]

    # Tile sizes: tm multiple of 16 (bf16 sublane pack), tk multiple of 128.
    tk = min(tk, _round_up(D, 128))
    B_pad = _round_up(max(B, tm), tm)
    D_pad = _round_up(D, tk)

    xf = x_nchw.reshape(B, D).astype(jnp.bfloat16)
    x_p = jnp.pad(xf, ((0, B_pad - B), (0, D_pad - D)))
    w_p = jnp.pad(w_packed.astype(jnp.bfloat16), ((0, D_pad - D), (0, 0)))
    b_p = b_packed.astype(jnp.float32)

    grid = (B_pad // tm, D_pad // tk)
    kernel = functools.partial(_double_attacker_kernel,
                               num_classes=NUM_CLASSES,
                               net2_offset=NET2_OFFSET,
                               beta=float(beta))

    bytes_accessed = (x_p.size * 2 + w_p.size * 2 + b_p.size * 4
                      + B_pad * LANE_PAD * 4)
    out_padded = pl.pallas_call(
        kernel,
        out_shape=jax.ShapeDtypeStruct((B_pad, LANE_PAD), jnp.float32),
        grid_spec=pltpu.PrefetchScalarGridSpec(
            num_scalar_prefetch=0,
            grid=grid,
            in_specs=[
                pl.BlockSpec((tm, tk), lambda i, k: (i, k)),          # x tile
                pl.BlockSpec((tk, LANE_PAD), lambda i, k: (k, 0)),     # packed W
                pl.BlockSpec((1, LANE_PAD), lambda i, k: (0, 0)),      # packed bias
            ],
            out_specs=pl.BlockSpec((tm, LANE_PAD), lambda i, k: (i, 0)),
            scratch_shapes=[pltpu.VMEM((tm, LANE_PAD), jnp.float32)],
        ),
        compiler_params=pltpu.CompilerParams(
            dimension_semantics=("parallel", "arbitrary")),
        cost_estimate=pl.CostEstimate(
            flops=2 * B_pad * D_pad * LANE_PAD,
            transcendentals=2 * B_pad * LANE_PAD,
            bytes_accessed=bytes_accessed),
    )(x_p, w_p, b_p)

    return out_padded[:B, :NUM_CLASSES]


def make_params(key, D):
    """Deterministic synthetic params for the two linear 'ATnetworks',
    packed into one [D, 128] bf16 weight and one [1, 128] f32 bias."""
    k1, k2, k3, k4 = jax.random.split(key, 4)
    scale = 1.0 / jnp.sqrt(jnp.float32(D))
    w1 = jax.random.normal(k1, (D, NUM_CLASSES), jnp.float32) * scale
    w2 = jax.random.normal(k2, (D, NUM_CLASSES), jnp.float32) * scale
    b1 = jax.random.normal(k3, (1, NUM_CLASSES), jnp.float32) * 0.1
    b2 = jax.random.normal(k4, (1, NUM_CLASSES), jnp.float32) * 0.1

    w_packed = jnp.zeros((D, LANE_PAD), jnp.float32)
    w_packed = w_packed.at[:, :NUM_CLASSES].set(w1)
    w_packed = w_packed.at[:, NET2_OFFSET:NET2_OFFSET + NUM_CLASSES].set(w2)
    b_packed = jnp.zeros((1, LANE_PAD), jnp.float32)
    b_packed = b_packed.at[:, :NUM_CLASSES].set(b1)
    b_packed = b_packed.at[:, NET2_OFFSET:NET2_OFFSET + NUM_CLASSES].set(b2)
    return w_packed.astype(jnp.bfloat16), b_packed


def reference(x_nchw, w_packed, b_packed, beta=BETA):
    """Pure-JAX reference on the same bf16-rounded operands."""
    B = x_nchw.shape[0]
    xf = x_nchw.reshape(B, -1).astype(jnp.bfloat16).astype(jnp.float32)
    wf = w_packed.astype(jnp.float32)
    w1 = wf[:, :NUM_CLASSES]
    w2 = wf[:, NET2_OFFSET:NET2_OFFSET + NUM_CLASSES]
    b1 = b_packed[:, :NUM_CLASSES].astype(jnp.float32)
    b2 = b_packed[:, NET2_OFFSET:NET2_OFFSET + NUM_CLASSES].astype(jnp.float32)
    l1 = jnp.dot(xf, w1, precision=jax.lax.Precision.HIGHEST) + b1
    l2 = jnp.dot(xf, w2, precision=jax.lax.Precision.HIGHEST) + b2
    s1 = jax.nn.softmax(l1, axis=1)
    s2 = jax.nn.softmax(l2, axis=1)
    return ((1.0 - beta) * s1 + beta * s2) / 2.0


if __name__ == "__main__":
    key = jax.random.PRNGKey(0)
    kx, kp = jax.random.split(key)

    B, C, H, W = 2, 4, 16, 16
    x = jax.random.normal(kx, (B, C, H, W), jnp.float32)
    D = C * H * W
    w_packed, b_packed = make_params(kp, D)

    out = double_net_attacker_pallas(x, w_packed, b_packed)
    out = jax.block_until_ready(out)

    ref = reference(x, w_packed, b_packed)
    assert out.shape == (B, NUM_CLASSES)
    max_err = jnp.max(jnp.abs(out - ref))
    assert jnp.allclose(out, ref, atol=1e-4, rtol=1e-4), f"max abs err {max_err}"
    print("KERNEL_OK")
</pallas_src>

<mosaic_0001>
module attributes {stable_mosaic.version = 11 : i64} {
  func.func @_double_attacker_kernel(%arg0: i32, %arg1: i32, %arg2: memref<16x512xbf16, #tpu.memory_space<vmem>>, %arg3: memref<512x128xbf16, #tpu.memory_space<vmem>>, %arg4: memref<1x128xf32, #tpu.memory_space<vmem>>, %arg5: memref<16x128xf32, #tpu.memory_space<vmem>>, %arg6: memref<16x128xf32, #tpu.memory_space<vmem>>) attributes {dimension_semantics = [#tpu.dimension_semantics<parallel>, #tpu.dimension_semantics<arbitrary>], iteration_bounds = array<i64: 1, 2>, scalar_prefetch = 0 : i64, scratch_operands = 1 : i64, tpu.core_type = #tpu.core_type<tc>, window_params = [{transform_indices = @transform_0, window_bounds = array<i64: 16, 512>}, {transform_indices = @transform_1, window_bounds = array<i64: 512, 128>}, {pipeline_mode = #tpu.pipeline_mode<synchronous>, transform_indices = @transform_2, window_bounds = array<i64: 1, 128>}, {transform_indices = @transform_3, window_bounds = array<i64: 16, 128>}]} {
    %c0_i32 = arith.constant 0 : i32
    %0 = arith.cmpi eq, %arg1, %c0_i32 : i32
    %1 = arith.extui %0 : i1 to i32
    %c0_i32_0 = arith.constant 0 : i32
    %2 = arith.cmpi ne, %1, %c0_i32_0 : i32
    scf.if %2 {
      %cst_9 = arith.constant 0.000000e+00 : f32
      %12 = vector.broadcast %cst_9 : f32 to vector<16x128xf32>
      %c0_10 = arith.constant 0 : index
      %c0_11 = arith.constant 0 : index
      %13 = vector.load %arg6[%c0_10, %c0_11] : memref<16x128xf32, #tpu.memory_space<vmem>>, vector<16x128xf32>
      tpu.vector_store %arg6[%c0_10, %c0_11], %12 {strides = array<i32>} : memref<16x128xf32, #tpu.memory_space<vmem>>, vector<16x128xf32>,
    } else {
    }
    %c0 = arith.constant 0 : index
    %c0_1 = arith.constant 0 : index
    %3 = vector.load %arg6[%c0, %c0_1] : memref<16x128xf32, #tpu.memory_space<vmem>>, vector<16x128xf32>
    %c0_2 = arith.constant 0 : index
    %c0_3 = arith.constant 0 : index
    %4 = vector.load %arg2[%c0_2, %c0_3] : memref<16x512xbf16, #tpu.memory_space<vmem>>, vector<16x512xbf16>
    %c0_4 = arith.constant 0 : index
    %c0_5 = arith.constant 0 : index
    %5 = vector.load %arg3[%c0_4, %c0_5] : memref<512x128xbf16, #tpu.memory_space<vmem>>, vector<512x128xbf16>
    %cst = arith.constant dense<0.000000e+00> : vector<16x128xf32>
    %6 = tpu.matmul %4, %5, %cst {dimension_numbers = #tpu.dot_dimension_numbers<[1], [0], [0], [1], [0, 0, 1, 1], [], []>} : vector<16x512xbf16>, vector<512x128xbf16>, vector<16x128xf32> -> vector<16x128xf32>
    %7 = arith.addf %3, %6 : vector<16x128xf32>
    %c0_6 = arith.constant 0 : index
    %c0_7 = arith.constant 0 : index
    %8 = vector.load %arg6[%c0_6, %c0_7] : memref<16x128xf32, #tpu.memory_space<vmem>>, vector<16x128xf32>
    tpu.vector_store %arg6[%c0_6, %c0_7], %7 {strides = array<i32>} : memref<16x128xf32, #tpu.memory_space<vmem>>, vector<16x128xf32>,
    %c1_i32 = arith.constant 1 : i32
    %9 = arith.cmpi eq, %arg1, %c1_i32 : i32
    %10 = arith.extui %9 : i1 to i32
    %c0_i32_8 = arith.constant 0 : i32
    %11 = arith.cmpi ne, %10, %c0_i32_8 : i32
    scf.if %11 {
      %c0_9 = arith.constant 0 : index
      %c0_10 = arith.constant 0 : index
      %12 = vector.load %arg6[%c0_9, %c0_10] : memref<16x128xf32, #tpu.memory_space<vmem>>, vector<16x128xf32>
      %c0_11 = arith.constant 0 : index
      %c0_12 = arith.constant 0 : index
      %13 = vector.load %arg4[%c0_11, %c0_12] : memref<1x128xf32, #tpu.memory_space<vmem>>, vector<1x128xf32>
      %14 = vector.broadcast %13 : vector<1x128xf32> to vector<16x128xf32>
      %15 = arith.addf %12, %14 : vector<16x128xf32>
      %16 = tpu.iota {dimensions = array<i32: 1>} : vector<16x128xi32>
      %c10_i32 = arith.constant 10 : i32
      %17 = vector.broadcast %c10_i32 : i32 to vector<16x128xi32>
      %18 = arith.cmpi slt, %16, %17 : vector<16x128xi32>
      %c64_i32 = arith.constant 64 : i32
      %19 = vector.broadcast %c64_i32 : i32 to vector<16x128xi32>
      %20 = arith.cmpi sge, %16, %19 : vector<16x128xi32>
      %c74_i32 = arith.constant 74 : i32
      %21 = vector.broadcast %c74_i32 : i32 to vector<16x128xi32>
      %22 = arith.cmpi slt, %16, %21 : vector<16x128xi32>
      %23 = arith.andi %20, %22 : vector<16x128xi1>
      %cst_13 = arith.constant -1.000000e+30 : f32
      %24 = vector.broadcast %cst_13 : f32 to vector<16x128xf32>
      %25 = arith.select %18, %15, %24 : vector<16x128xi1>, vector<16x128xf32>
      %cst_14 = arith.constant dense<0xFF800000> : vector<16xf32>
      %26 = vector.multi_reduction <maximumf>, %25, %cst_14 [1] : vector<16x128xf32> to vector<16xf32>
      %27 = vector.shape_cast %26 : vector<16xf32> to vector<16x1xf32>
      %28 = vector.broadcast %27 : vector<16x1xf32> to vector<16x128xf32>
      %29 = arith.subf %25, %28 : vector<16x128xf32>
      %30 = math.exp %29 : vector<16x128xf32>
      %cst_15 = arith.constant 0.000000e+00 : f32
      %31 = vector.broadcast %cst_15 : f32 to vector<16x128xf32>
      %32 = arith.select %18, %30, %31 : vector<16x128xi1>, vector<16x128xf32>
      %cst_16 = arith.constant dense<0.000000e+00> : vector<16xf32>
      %33 = vector.multi_reduction <add>, %32, %cst_16 [1] : vector<16x128xf32> to vector<16xf32>
      %34 = vector.shape_cast %33 : vector<16xf32> to vector<16x1xf32>
      %35 = tpu.reciprocal %34 : vector<16x1xf32> -> vector<16x1xf32>
      %36 = vector.broadcast %35 : vector<16x1xf32> to vector<16x128xf32>
      %37 = arith.mulf %32, %36 : vector<16x128xf32>
      %cst_17 = arith.constant -1.000000e+30 : f32
      %38 = vector.broadcast %cst_17 : f32 to vector<16x128xf32>
      %39 = arith.select %23, %15, %38 : vector<16x128xi1>, vector<16x128xf32>
      %cst_18 = arith.constant dense<0xFF800000> : vector<16xf32>
      %40 = vector.multi_reduction <maximumf>, %39, %cst_18 [1] : vector<16x128xf32> to vector<16xf32>
      %41 = vector.shape_cast %40 : vector<16xf32> to vector<16x1xf32>
      %42 = vector.broadcast %41 : vector<16x1xf32> to vector<16x128xf32>
      %43 = arith.subf %39, %42 : vector<16x128xf32>
      %44 = math.exp %43 : vector<16x128xf32>
      %cst_19 = arith.constant 0.000000e+00 : f32
      %45 = vector.broadcast %cst_19 : f32 to vector<16x128xf32>
      %46 = arith.select %23, %44, %45 : vector<16x128xi1>, vector<16x128xf32>
      %cst_20 = arith.constant dense<0.000000e+00> : vector<16xf32>
      %47 = vector.multi_reduction <add>, %46, %cst_20 [1] : vector<16x128xf32> to vector<16xf32>
      %48 = vector.shape_cast %47 : vector<16xf32> to vector<16x1xf32>
      %49 = tpu.reciprocal %48 : vector<16x1xf32> -> vector<16x1xf32>
      %50 = vector.broadcast %49 : vector<16x1xf32> to vector<16x128xf32>
      %51 = arith.mulf %46, %50 : vector<16x128xf32>
      %c64_i32_21 = arith.constant 64 : i32
      %52 = tpu.dynamic_rotate %51 by %c64_i32_21 dim 1 : vector<16x128xf32>, i32 -> vector<16x128xf32>
      %cst_22 = arith.constant 5.000000e-01 : f32
      %53 = vector.broadcast %cst_22 : f32 to vector<16x128xf32>
      %54 = arith.mulf %53, %37 : vector<16x128xf32>
      %cst_23 = arith.constant 5.000000e-01 : f32
      %55 = vector.broadcast %cst_23 : f32 to vector<16x128xf32>
      %56 = arith.mulf %55, %52 : vector<16x128xf32>
      %57 = arith.addf %54, %56 : vector<16x128xf32>
      %cst_24 = arith.constant 5.000000e-01 : f32
      %58 = vector.broadcast %cst_24 : f32 to vector<16x128xf32>
      %59 = arith.mulf %57, %58 : vector<16x128xf32>
      %c0_25 = arith.constant 0 : index
      %c0_26 = arith.constant 0 : index
      %60 = vector.load %arg5[%c0_25, %c0_26] : memref<16x128xf32, #tpu.memory_space<vmem>>, vector<16x128xf32>
      tpu.vector_store %arg5[%c0_25, %c0_26], %59 {strides = array<i32>} : memref<16x128xf32, #tpu.memory_space<vmem>>, vector<16x128xf32>,
    } else {
    }
    return
  }
  func.func @transform_0(%arg0: i32, %arg1: i32) -> (i32, i32) {
    %c0_i32 = arith.constant 0 : i32
    return %arg0, %arg1 : i32, i32
  }
  func.func @transform_1(%arg0: i32, %arg1: i32) -> (i32, i32) {
    %c0_i32 = arith.constant 0 : i32
    %c0_i32_0 = arith.constant 0 : i32
    return %arg1, %c0_i32 : i32, i32
  }
  func.func @transform_2(%arg0: i32, %arg1: i32) -> (i32, i32) {
    %c0_i32 = arith.constant 0 : i32
    %c0_i32_0 = arith.constant 0 : i32
    %c0_i32_1 = arith.constant 0 : i32
    return %c0_i32, %c0_i32_0 : i32, i32
  }
  func.func @transform_3(%arg0: i32, %arg1: i32) -> (i32, i32) {
    %c0_i32 = arith.constant 0 : i32
    %c0_i32_0 = arith.constant 0 : i32
    return %arg0, %c0_i32 : i32, i32
  }
}

</mosaic_0001>

<bundles_post_ra>
// kernel: tpu_custom_call.1
= control target key start
LH: loop header
LB: loop body
LE: loop exit
PB: predicated region body
PF: predicated region fallthrough
CT: control target
= control target key end

     0   :  { %8 = vsyncpa [#allocation4], 0  ;;  %s1465_s0 = inlined_call_operand.hbm [shape: bf16[16,1024], index: 0, kind: input, shape index: {}]   ;;  %s1466_s1 = inlined_call_operand.hbm [shape: bf16[1024,128], index: 1, kind: input, shape index: {}]   ;;  %s1467_s2 = inlined_call_operand.vmem [shape: f32[1,128], index: 2, kind: input, shape index: {}]   ;;  %s1468_s3 = inlined_call_operand.hbm [shape: f32[16,128], index: 3, kind: output, shape index: {}]  }
   0x1   :  { %10 = vsyncpa [#allocation4 + $0x1], 0 }
   0x2   :  { %11 = vsyncpa [#allocation7], 0 }
   0x3   :  { %13 = vsyncpa [#allocation7 + $0x1], 0 }
   0x4   :  { %14 = vsyncpa [#allocation5], 0  ;;  %s1205_s12 = smov 0   ;;  %s1207_s13 = smov 0  }
   0x5   :  { %s1209_s14 = smov 0   ;;  %s1211_s15 = smov 0  }
   0x6   :  { %s1213_s16 = smov 0   ;;  %s1215_s17 = smov 0  }
   0x7 LB: > { %s796_s18 = sadd.s32 4294967295, %s1171_s17   ;;  %s29_s19 = sadd.s32 1, %s1167_s16  ;;  %s1171_s17 = sphi %s1215_s17, %s20_s17   ;;  %s1167_s16 = sphi %s1213_s16, %s1483_s16   ;;  %s1163_s15 = sphi %s1211_s15, %s1482_s15   ;;  %s1159_s14 = sphi %s1209_s14, %s1481_s14   ;;  %s1155_s13 = sphi %s1207_s13, %s1480_s13   ;;  %s1151_s12 = sphi %s1205_s12, %s1479_s12  }
   0x8   : > { %p30_p0 = scmp.ge.s32.totalorder %s29_s19, 2  ;;  %s41_s20 = sadd.s32 1, %s1159_s14 }
   0x9   : > { %p48_p1 = scmp.ne.s32.totalorder %s1159_s14, %s1155_s13  ;;  %p49_p2 = scmp.eq.s32.totalorder %s1171_s17, 0 }
   0xa   : > { %s1485_s19 = smov (%p30_p0, %s29_s19), 0  ;;  %p54_p4 = scmp.ne.s32.totalorder %s1155_s13, %s1151_s12 }
   0xb   : > { %p1241_p3 = por %p49_p2, %p48_p1  ;;  %s37_s22 = ssub.s32 %s1167_s16, %s1485_s19 }
   0xc   : > { %p55_p5 = scmp.eq.s32.totalorder %s796_s18, 0  ;;  %p39_p6 = scmp.eq.s32.totalorder %s37_s22, 0 }
   0xd   : > { %p912_p8 = scmp.lt.s32.totalorder %s1171_s17, 2  ;;  %s1259_s25 = sand.u32 1, %s1159_s14  }
   0xe   : > { %p1250_p7 = por %p55_p5, %p54_p4  ;;  %s851_s26 = sshll.u32 %s1167_s16, 8 }
   0xf   : > { %s1256_s24 = scalar_select %p39_p6, %s1159_s14, %s41_s20  }
  0x10   : > { %s1471_s23 = scalar_select %p1250_p7, 1, 0 }
  0x11   : > { %s799_s27 = sshll.u32 %s1259_s25, 5  ;;  %s1266_s30 = scalar_lea.hbm %s1465_s0, %s851_s26 }
  0x12   : > { %s158_s4 = scalar_lea.vmem [#allocation3], %s799_s27  ;;  %p1270_p9 = pnand %p912_p8, %p1241_p3 }
  0x13   : > { %s168_s5 = sshll.u32 %s158_s4, 4  ;;  %s155_s7 = scalar_lea.sflag [#allocation4], %s1259_s25  ;;  %s1274_s5 = int_to_ptr.vmem [resolvable:$true] %s168_s5 }
  0x14   : > { %s1027_s8 = scalar_lea.hbm %s1266_s30, 512  ;;  %p1029_p12 = pneg %p1270_p9 }
  0x15   : > { %p1028_p11 = scmp.ne.s32.totalorder %s1266_s30, %s1027_s8  ;;  %s1032_s11 = scalar_lea.hbm %s1465_s0, 1024 }
  0x16   : > { %p1033_p1 = scmp.lt.u32.totalorder %s1266_s30, %s1465_s0  ;;  %p1034_p2 = scmp.lt.u32.totalorder %s1032_s11, %s1027_s8 }
  0x17   : > { %p1030_p13 = pnand %p1029_p12, %p1028_p11  ;;  %p1036_p4 = scmp.lt.u32.totalorder %s1027_s8, %s1266_s30 }
  0x18   : > { %p1035_p3 = por %p1034_p2, %p1033_p1 }
  0x19   : > { %p1031_p0 = pneg %p1030_p13 }
  0x1a   : > { %p1037_p5 = por %p1036_p4, %p1035_p3 }
  0x1c   : > { %p1038_p6 = pnand %p1037_p5, %p1031_p0 }
  0x1e   : > { %1041 = shalt.err (!%p1038_p6)
}
  0x1f   : > { %s1042_s21 = scalar_lea.vmem %s1274_s5, 512  ;;  %s1173_s22 = smov [#allocation3]  }
  0x20   : > { %p1043_p8 = scmp.ne.s32.totalorder %s1274_s5, %s1042_s21  ;;  %s1047_s26 = sshll.u32 %s1173_s22, 4  ;;  %s1048_s26 = int_to_ptr.vmem [resolvable:$false] %s1047_s26 }
  0x21   : > { %s1049_s27 = scalar_lea.vmem %s1048_s26, 1024  ;;  %p1050_p10 = scmp.lt.s32.totalorder %s1274_s5, %s1048_s26 }
  0x22   : > { %p1045_p11 = pnand %p1043_p8, %p1029_p12  ;;  %p1051_p1 = scmp.lt.s32.totalorder %s1049_s27, %s1042_s21 }
  0x24   : > { %p1046_p13 = pneg %p1045_p11  ;;  %p1052_p2 = por %p1051_p1, %p1050_p10 }
  0x26   : > { %p1053_p3 = pnand %p1052_p2, %p1046_p13 }
  0x28   : > { %1056 = shalt.err (!%p1053_p3)
}
  0x29   : > { %s1174_s28 = smov 512   ;;  %s1175_s29 = smov 256  }
  0x2a   : > { %s1176_s4 = smov 16   ;;  %p197_p0 = scmp.lt.s32.totalorder %s1171_s17, 3 }
  0x2b   : > { %908 = dma.hbm_to_vmem [thread:$0]  (!%p1270_p9), %s1266_s30, 512, %s1274_s5, %s155_s7, %s1174_s28, %s1175_s29, %s1176_s4  }
  0x2c   : > { %s802_s8 = sshll.u32 %s1259_s25, 8  ;;  %s852_s9 = sshll.u32 %s1167_s16, 12 }
  0x2d   : > { %p1473_p10 = scmp.ge.s32.totalorder %s1171_s17, 1  ;;  %s1317_s20 = scalar_lea.hbm %s1466_s1, %s852_s9 }
  0x2e   : > { %s182_s21 = scalar_lea.vmem [#allocation6], %s802_s8  ;;  %s179_s30 = scalar_lea.sflag [#allocation7], %s1259_s25 }
  0x2f   : > { %p1310_p4 = pnand %p1473_p10, %p197_p0  ;;  %s189_s22 = sshll.u32 %s182_s21, 4  ;;  %s1319_s22 = int_to_ptr.vmem [resolvable:$true] %s189_s22 }
  0x30   : > { %s1057_s5 = scalar_lea.hbm %s1317_s20, 4096  ;;  %s1062_s27 = scalar_lea.hbm %s1466_s1, 8192 }
  0x31   : > { %p1058_p5 = scmp.ne.s32.totalorder %s1317_s20, %s1057_s5  ;;  %p1063_p11 = scmp.lt.u32.totalorder %s1317_s20, %s1466_s1 }
  0x32   : > { %p1064_p13 = scmp.lt.u32.totalorder %s1062_s27, %s1057_s5  ;;  %p1066_p2 = scmp.lt.u32.totalorder %s1057_s5, %s1317_s20 }
  0x33   : > { %p1060_p6 = pnand %p1058_p5, %p1029_p12 }
  0x34   : > { %p1065_p1 = por %p1064_p13, %p1063_p11 }
  0x35   : > { %p1061_p8 = pneg %p1060_p6 }
  0x36   : > { %p1067_p3 = por %p1066_p2, %p1065_p1 }
  0x38   : > { %p1068_p0 = pnand %p1067_p3, %p1061_p8 }
  0x3a   : > { %1071 = shalt.err (!%p1068_p0)
}
  0x3b   : > { %s1072_s4 = scalar_lea.vmem %s1319_s22, 4096  ;;  %s1177_s8 = smov [#allocation6]  }
  0x3c   : > { %p1073_p10 = scmp.ne.s32.totalorder %s1319_s22, %s1072_s4  ;;  %s1077_s9 = sshll.u32 %s1177_s8, 4  ;;  %s1078_s9 = int_to_ptr.vmem [resolvable:$false] %s1077_s9 }
  0x3d   : > { %s1079_s11 = scalar_lea.vmem %s1078_s9, 8192  ;;  %p1080_p7 = scmp.lt.s32.totalorder %s1319_s22, %s1078_s9 }
  0x3e   : > { %p1075_p5 = pnand %p1073_p10, %p1029_p12  ;;  %p1081_p11 = scmp.lt.s32.totalorder %s1079_s11, %s1072_s4 }
  0x40   : > { %p1076_p6 = pneg %p1075_p5  ;;  %p1082_p13 = por %p1081_p11, %p1080_p7 }
  0x42   : > { %p1083_p1 = pnand %p1082_p13, %p1076_p6 }
  0x44   : > { %1086 = shalt.err (!%p1083_p1)
}
  0x45   : > { %s1178_s12 = smov 64   ;;  %s1179_s21 = smov 4  }
  0x46   : > { %911 = dma.hbm_to_vmem [thread:$0]  (!%p1270_p9), %s1317_s20, 4096, %s1319_s22, %s179_s30, %s1178_s12, %s1178_s12, %s1179_s21  }
  0x47   : > { %201 = sbr.rel (%p1310_p4) target bundleno = 822 (0x336), region = 32  ;;  %s203_s5 = sand.u32 (!%p1310_p4), 1, %s1155_s13  }
  0x48   : > { %s806_s7 = sshll.u32 (!%p1310_p4), %s203_s5, 5  ;;  %s204_s26 = scalar_lea.sflag (!%p1310_p4), [#allocation4], %s203_s5 }
  0x49   : > { %s1350_s27 = scalar_lea.vmem (!%p1310_p4), [#allocation3], %s806_s7  ;;  %p1475_p7 = scmp.ne.s32.totalorder (!%p1310_p4), %s1471_s23, 0 }
  0x4e   : > { %1138 = dma.done.wait (%p1475_p7), %s204_s26, 512  }
  0x4f   : > { %1140 = vsyncadd (%p1475_p7), %s204_s26, 4294966784  ;;  %s807_s28 = sshll.u32 %s203_s5, 8  ;;  %s213_s6 = scalar_lea.sflag [#allocation7], %s203_s5 }
  0x50   : > { %s1356_s25 = scalar_lea.vmem [#allocation6], %s807_s28 }
  0x51   : > { %1142 = dma.done.wait (%p1475_p7), %s213_s6, 4096  }
  0x52   : > { %1144 = vsyncadd (%p1475_p7), %s213_s6, 4294963200  ;;  %p808_p9 = scmp.ne.s32.totalorder %s1163_s15, 0 }
  0x53   : > { %v1180_v0 = vmov (!%p808_p9), 0.0  }
  0x54   : > { %247 = sbr.rel (%p808_p9) target bundleno = 91 (0x5b), region = 44  ;;  %248 = vst [vmem:[#allocation2] sm:$0xff] (!%p808_p9), %v1180_v0  ;;  %249 = vst [vmem:[#allocation2 + $0x8] sm:$0xff] (!%p808_p9), %v1180_v0 }
  0x5b PF: > { %v973_v1 = vld [vmem:[%s1356_s25 + $0x40] sm:$0xff]   ;;  %v977_v5 = vld [vmem:[%s1356_s25 + $0x48] sm:$0xff]   ;;  %v981_v9 = vld [vmem:[%s1356_s25 + $0x50] sm:$0xff]   ;;  %p845_p12 = scmp.ne.s32.totalorder %s1163_s15, 1 }
  0x5c   : > { %v974_v2 = vld [vmem:[%s1356_s25 + $0xc0] sm:$0xff]   ;;  %853 = vmatprep.subr.bf16.mxu0 %v973_v1  ;;  %v978_v6 = vld [vmem:[%s1356_s25 + $0xc8] sm:$0xff]   ;;  %v982_v10 = vld [vmem:[%s1356_s25 + $0xd0] sm:$0xff]   ;;  %v633_v57 = vlaneseq (!%p845_p12)  ;;  %s1181_s15 = smov (!%p845_p12), 64  }
  0x5d   : > { %v975_v3 = vld [vmem:[%s1356_s25] sm:$0xff]   ;;  %875 = vmatprep.subr.bf16.mxu1 %v974_v2  ;;  %v979_v7 = vld [vmem:[%s1356_s25 + $0x8] sm:$0xff]   ;;  %v983_v11 = vld [vmem:[%s1356_s25 + $0x10] sm:$0xff]  }
  0x5e   : > { %v976_v4 = vld [vmem:[%s1356_s25 + $0x80] sm:$0xff]   ;;  %854 = vmatpush3.bf16.msra.mxu0 %v975_v3  ;;  %v980_v8 = vld [vmem:[%s1356_s25 + $0x88] sm:$0xff]   ;;  %v984_v12 = vld [vmem:[%s1356_s25 + $0x90] sm:$0xff]   ;;  %v634_v60 = vand.u32 (!%p845_p12), 127, %v633_v57 }
  0x5f   : > { %876 = vmatpush3.bf16.msra.mxu1 %v976_v4  ;;  %855 = vmatprep.subr.bf16.mxu0 %v977_v5  ;;  %v985_v13 = vld [vmem:[%s1356_s25 + $0x58] sm:$0xff]   ;;  %v989_v17 = vld [vmem:[%s1356_s25 + $0x60] sm:$0xff]   ;;  %v993_v21 = vld [vmem:[%s1356_s25 + $0x68] sm:$0xff]  }
  0x60   : > { %877 = vmatprep.subr.bf16.mxu1 %v978_v6  ;;  %v986_v14 = vld [vmem:[%s1356_s25 + $0xd8] sm:$0xff]   ;;  %v990_v18 = vld [vmem:[%s1356_s25 + $0xe0] sm:$0xff]   ;;  %v994_v22 = vld [vmem:[%s1356_s25 + $0xe8] sm:$0xff]   ;;  %vm636_vm0 = vcmp.ge.s32.totalorder (!%p845_p12), %v634_v60, 64  ;;  %vm637_vm1 = vcmp.lt.s32.totalorder (!%p845_p12), %v634_v60, 74  ;;  %vm635_vm2 = vcmp.lt.s32.totalorder (!%p845_p12), %v634_v60, 10 }
  0x61   : > { %v987_v15 = vld [vmem:[%s1356_s25 + $0x18] sm:$0xff]   ;;  %v991_v19 = vld [vmem:[%s1356_s25 + $0x20] sm:$0xff]   ;;  %v995_v23 = vld [vmem:[%s1356_s25 + $0x28] sm:$0xff]  }
  0x62   : > { %856 = vmatpush3.bf16.msra.mxu0 %v979_v7  ;;  %v988_v16 = vld [vmem:[%s1356_s25 + $0x98] sm:$0xff]   ;;  %v992_v20 = vld [vmem:[%s1356_s25 + $0xa0] sm:$0xff]   ;;  %v996_v24 = vld [vmem:[%s1356_s25 + $0xa8] sm:$0xff]  }
  0x63   : > { %878 = vmatpush3.bf16.msra.mxu1 %v980_v8  ;;  %857 = vmatprep.subr.bf16.mxu0 %v981_v9  ;;  %v997_v25 = vld [vmem:[%s1356_s25 + $0x70] sm:$0xff]   ;;  %v1001_v29 = vld [vmem:[%s1356_s25 + $0x78] sm:$0xff]   ;;  %vm1403_vm3 = vmand (!%p845_p12), %vm636_vm0, %vm637_vm1 }
  0x64   : > { %879 = vmatprep.subr.bf16.mxu1 %v982_v10  ;;  %v998_v26 = vld [vmem:[%s1356_s25 + $0xf0] sm:$0xff]   ;;  %v1002_v30 = vld [vmem:[%s1356_s25 + $0xf8] sm:$0xff]  }
  0x65   : > { %v999_v27 = vld [vmem:[%s1356_s25 + $0x30] sm:$0xff]   ;;  %v1003_v31 = vld [vmem:[%s1356_s25 + $0x38] sm:$0xff]  }
  0x66   : > { %858 = vmatpush3.bf16.msra.mxu0 %v983_v11  ;;  %v1000_v28 = vld [vmem:[%s1356_s25 + $0xb0] sm:$0xff]   ;;  %v1004_v32 = vld [vmem:[%s1356_s25 + $0xb8] sm:$0xff]  }
  0x67   : > { %880 = vmatpush3.bf16.msra.mxu1 %v984_v12  ;;  %859 = vmatprep.subr.bf16.mxu0 %v985_v13  ;;  %v1005_v33 = vld [vmem:[%s1350_s27] ss:$16 sps:$4 sm:$0xff]   ;;  %v1007_v34 = vld [vmem:[%s1350_s27 + $0x4] ss:$16 sps:$4 sm:$0xff]   ;;  %v1008_v35 = vld [vmem:[%s1350_s27 + $0x8] ss:$16 sps:$4 sm:$0xff]  }
  0x68   : > { %881 = vmatprep.subr.bf16.mxu1 %v986_v14  ;;  %v1010_v36 = vld [vmem:[%s1350_s27 + $0xc] ss:$16 sps:$4 sm:$0xff]   ;;  %564 = vmatprep.mubr.bf16.mxu0 %v1007_v34  ;;  %v250_v46 = vld [vmem:[#allocation2] sm:$0xff] }
  0x69   : > { %605 = vmatprep.mubr.bf16.mxu1 %v1010_v36  ;;  %v251_v51 = vld [vmem:[#allocation2 + $0x8] sm:$0xff]  ;;  %v846_v56 = vld [vmem:[%s1467_s2] ss:$0 sm:$0xff] (!%p845_p12) }
  0x6a   : > { %860 = vmatpush3.bf16.msra.mxu0 %v987_v15 }
  0x6b   : > { %882 = vmatpush3.bf16.msra.mxu1 %v988_v16  ;;  %861 = vmatprep.subr.bf16.mxu0 %v989_v17 }
  0x6c   : > { %883 = vmatprep.subr.bf16.mxu1 %v990_v18 }
  0x6e   : > { %862 = vmatpush3.bf16.msra.mxu0 %v991_v19 }
  0x6f   : > { %884 = vmatpush3.bf16.msra.mxu1 %v992_v20  ;;  %863 = vmatprep.subr.bf16.mxu0 %v993_v21 }
  0x70   : > { %885 = vmatprep.subr.bf16.mxu1 %v994_v22 }
  0x72   : > { %864 = vmatpush3.bf16.msra.mxu0 %v995_v23 }
  0x73   : > { %886 = vmatpush3.bf16.msra.mxu1 %v996_v24  ;;  %865 = vmatprep.subr.bf16.mxu0 %v997_v25 }
  0x74   : > { %887 = vmatprep.subr.bf16.mxu1 %v998_v26 }
  0x76   : > { %866 = vmatpush3.bf16.msra.mxu0 %v999_v27 }
  0x77   : > { %888 = vmatpush3.bf16.msra.mxu1 %v1000_v28  ;;  %867 = vmatprep.subr.bf16.mxu0 %v1001_v29 }
  0x78   : > { %889 = vmatprep.subr.bf16.mxu1 %v1002_v30 }
  0x7a   : > { %868 = vmatpush3.bf16.msra.mxu0 %v1003_v31 }
  0x7b   : > { %890 = vmatpush3.bf16.msra.mxu1 %v1004_v32 }
  0x7d   : > { %565 = vmatmul.mubr.bf16.vlgmr.msra.gmra.mrb[0].mxu0 %v1005_v33 }
  0x7e   : > { %606 = vmatmul.mubr.bf16.vlgmr.msra.gmra.mrb[0].mxu1 %v1008_v35 }
 0x150   : > { %v869_v37 = vpop.f32.mrb[0].mxu0 }
 0x151   : > { %v891_v38 = vpop.f32.mrb[0].mxu1  ;;  %v870_v39 = vpop.f32.mrb[1].mxu0 }
 0x152   : > { %v871_v40 = vadd.f32 %v870_v39, %v869_v37  ;;  %v892_v41 = vpop.f32.mrb[1].mxu1  ;;  %v872_v42 = vpop.f32.mrb[2].mxu0 }
 0x153   : > { %v893_v43 = vadd.f32 %v892_v41, %v891_v38  ;;  %v894_v44 = vpop.f32.mrb[2].mxu1  ;;  %v873_v45 = vpop.f32.mrb[3].mxu0 }
 0x154   : > { %v874_v47 = vadd.f32 %v873_v45, %v872_v42  ;;  %v895_v48 = vpop.f32.mrb[3].mxu1 }
 0x155   : > { %v608_v49 = vadd.f32 %v893_v43, %v871_v40  ;;  %v896_v50 = vadd.f32 %v895_v48, %v894_v44  ;;  %621 = sbr.rel (%p845_p12) target bundleno = 796 (0x31c), region = 48 }
 0x157   : > { %v614_v52 = vadd.f32 %v608_v49, %v250_v46  ;;  %v611_v53 = vadd.f32 %v896_v50, %v874_v47 }
 0x159   : > { %616 = vst [vmem:[#allocation2] sm:$0xff] %v614_v52  ;;  %v615_v54 = vadd.f32 %v611_v53, %v251_v51 }
 0x15b   : > { %617 = vst [vmem:[#allocation2 + $0x8] sm:$0xff] %v615_v54 }
 0x160   : > { %v622_v55 = vld [vmem:[#allocation2] sm:$0xff] }
 0x161   : > { %v631_v59 = vadd.f32 %v846_v56, %v622_v55 }
 0x162   : > { %v623_v58 = vld [vmem:[#allocation2 + $0x8] sm:$0xff] }
 0x163   : > { %v632_v61 = vadd.f32 %v846_v56, %v623_v58  ;;  %v639_v63 = vsel %vm635_vm2, %v631_v59, -1e+30  ;;  %v661_v0 = vsel %vm1403_vm3, %v631_v59, -1e+30 }
 0x164   : > { %641 = vmax.xlane.f32.xlu1 %v639_v63  ;;  %663 = vmax.xlane.f32.xlu0 %v661_v0 }
 0x165   : > { %v640_v1 = vsel %vm635_vm2, %v632_v61, -1e+30  ;;  %v662_v2 = vsel %vm1403_vm3, %v632_v61, -1e+30 }
 0x168   : > { %643 = vmax.xlane.f32.xlu1 %v640_v1  ;;  %665 = vmax.xlane.f32.xlu0 %v662_v2 }
 0x1f1   : > { %v642_v3 = vpop.xlane.xlu1 %641  ;;  %v664_v4 = vpop.xlane.xlu0 %663 }
 0x1f2   : > { %v645_v5 = vsub.f32 %v639_v63, %v642_v3  ;;  %v667_v6 = vsub.f32 %v661_v0, %v664_v4 }
 0x1f4   : > { %v647_v7 = vmul.f32 1.442695, %v645_v5  ;;  %v669_v8 = vmul.f32 1.442695, %v667_v6 }
 0x1f5   : > { %v644_v9 = vpop.xlane.xlu1 %643  ;;  %v666_v10 = vpop.xlane.xlu0 %665 }
 0x1f6   : > { %1011 = vpow2.f32 %v647_v7  ;;  %v646_v11 = vsub.f32 %v640_v1, %v644_v9  ;;  %v668_v12 = vsub.f32 %v662_v2, %v666_v10 }
 0x1f7   : > { %1013 = vpow2.f32 %v669_v8 }
 0x1f8   : > { %v649_v13 = vmul.f32 1.442695, %v646_v11  ;;  %v671_v14 = vmul.f32 1.442695, %v668_v12 }
 0x1fa   : > { %1015 = vpow2.f32 %v649_v13 }
 0x1fb   : > { %1017 = vpow2.f32 %v671_v14 }
 0x200   : > { %v1012_v15 = vpop.eup %1011 }
 0x201   : > { %v1014_v16 = vpop.eup %1013  ;;  %v651_v19 = vsel %vm635_vm2, %v1012_v15, 0.0 }
 0x202   : > { %v673_v17 = vsel %vm1403_vm3, %v1014_v16, 0.0 }
 0x203   : > { %675 = vadd.xlane.f32.xlu0 %v673_v17 }
 0x204   : > { %v1016_v18 = vpop.eup %1015 }
 0x205   : > { %v1018_v20 = vpop.eup %1017  ;;  %v652_v22 = vsel %vm635_vm2, %v1016_v18, 0.0 }
 0x206   : > { %v674_v21 = vsel %vm1403_vm3, %v1018_v20, 0.0 }
 0x207   : > { %677 = vadd.xlane.f32.xlu1 %v674_v21  ;;  %653 = vadd.xlane.f32.xlu0 %v651_v19 }
 0x20b   : > { %655 = vadd.xlane.f32.xlu1 %v652_v22 }
 0x290   : > { %v676_v23 = vpop.xlane.xlu0 %675 }
 0x291   : > { %1019 = vrcp.f32 %v676_v23 }
 0x294   : > { %v678_v24 = vpop.xlane.xlu1 %677  ;;  %v654_v29 = vpop.xlane.xlu0 %653 }
 0x295   : > { %1021 = vrcp.f32 %v678_v24 }
 0x296   : > { %1023 = vrcp.f32 %v654_v29 }
 0x298   : > { %v656_v30 = vpop.xlane.xlu1 %655 }
 0x299   : > { %1025 = vrcp.f32 %v656_v30 }
 0x29b   : > { %v1020_v25 = vpop.eup %1019 }
 0x29c   : > { %v681_v26 = vmul.f32 %v1020_v25, %v673_v17 }
 0x29e   : > { %683 = vrot.lane.b32.xlu0 %v681_v26, %s1181_s15 }
 0x29f   : > { %v1022_v27 = vpop.eup %1021 }
 0x2a0   : > { %v682_v28 = vmul.f32 %v1022_v27, %v674_v21  ;;  %v1024_v31 = vpop.eup %1023 }
 0x2a1   : > { %v659_v32 = vmul.f32 %v1024_v31, %v651_v19 }
 0x2a2   : > { %685 = vrot.lane.b32.xlu1 %v682_v28, %s1181_s15 }
 0x2a3   : > { %v1026_v33 = vpop.eup %1025  ;;  %v687_v35 = vmul.f32 0.5, %v659_v32 }
 0x2a4   : > { %v660_v37 = vmul.f32 %v1026_v33, %v652_v22 }
 0x2a6   : > { %v688_v41 = vmul.f32 0.5, %v660_v37 }
 0x310   : > { %v684_v34 = vpop.permute.xlu0 %683 }
 0x311   : > { %v689_v36 = vmul.f32 0.5, %v684_v34 }
 0x313   : > { %v691_v38 = vadd.f32 %v689_v36, %v687_v35 }
 0x314   : > { %v686_v40 = vpop.permute.xlu1 %685 }
 0x315   : > { %v693_v39 = vmul.f32 0.5, %v691_v38  ;;  %v690_v42 = vmul.f32 0.5, %v686_v40 }
 0x317   : > { %695 = vst [vmem:[#allocation8] sm:$0xff] %v693_v39  ;;  %v692_v43 = vadd.f32 %v690_v42, %v688_v41 }
 0x319   : > { %v694_v44 = vmul.f32 0.5, %v692_v43 }
 0x31b   : > { %696 = vst [vmem:[#allocation8 + $0x8] sm:$0xff] %v694_v44 }
 0x31c PF: > { %p1421_p4 = scmp.eq.s32.totalorder %s796_s18, 1  ;;  %s1182_s22 = smov [#allocation8]  }
 0x31d   : > { %s706_s30 = sshll.u32 %s1182_s22, 4  ;;  %s707_s30 = int_to_ptr.vmem [resolvable:$true] %s706_s30 }
 0x31e   : > { %s1087_s29 = scalar_lea.vmem %s707_s30, 256  ;;  %p1094_p0 = scmp.lt.s32.totalorder %s707_s30, %s707_s30 }
 0x31f   : > { %p1088_p8 = scmp.ne.s32.totalorder %s707_s30, %s1087_s29  ;;  %p1095_p10 = scmp.lt.s32.totalorder %s1087_s29, %s1087_s29 }
 0x321   : > { %p1089_p2 = pnand %p1088_p8, %p1421_p4  ;;  %p1096_p5 = por %p1095_p10, %p1094_p0 }
 0x323   : > { %p1090_p3 = pneg %p1089_p2 }
 0x325   : > { %p1097_p6 = pnand %p1096_p5, %p1090_p3 }
 0x327   : > { %1100 = shalt.err (!%p1097_p6)
}
 0x328   : > { %s1101_s18 = scalar_lea.hbm %s1468_s3, 256 }
 0x329   : > { %p1102_p11 = scmp.ne.s32.totalorder %s1468_s3, %s1101_s18  ;;  %p1107_p7 = scmp.lt.u32.totalorder %s1101_s18, %s1468_s3 }
 0x32b   : > { %p1103_p13 = pnand %p1102_p11, %p1421_p4 }
 0x32d   : > { %p1104_p1 = pneg %p1103_p13 }
 0x32f   : > { %p1109_p9 = pnand %p1107_p7, %p1104_p1 }
 0x331   : > { %1112 = shalt.err (!%p1109_p9)
}
 0x332   : > { %s1183_s5 = smov 128   ;;  %s1184_s7 = smov 8  }
 0x333   : > { %902 = dma.vmem_to_hbm [thread:$0]  (%p1421_p4), %s707_s30, 256, %s1468_s3, [#allocation5], %s1183_s5, %s1183_s5, %s1184_s7  }
 0x334   : > { %1146 = dma.done.wait (%p1421_p4), [#allocation5], 256  }
 0x335   : > { %1148 = vsyncadd (%p1421_p4), [#allocation5], 4294967040 }
 0x336 PF: > { %s20_s17 = sadd.s32 1, %s1171_s17   ;;  %s1479_s12 = smov %s1155_s13 }
 0x337   : > { %p17_p12 = scmp.ge.s32.totalorder %s20_s17, 4   ;;  %s1480_s13 = smov %s1159_s14 }
 0x338   : > { %s1481_s14 = smov %s1256_s24  ;;  %s1482_s15 = smov %s1167_s16 }
 0x339   : > { %s1483_s16 = smov %s1485_s19  ;;  %19 = sbr.rel (!%p17_p12) target bundleno = 7 (0x7), region = 91 }
 0x340   :  { %722 = vsyncpa [#allocation4], 1 }
 0x341   :  { %724 = vsyncpa [#allocation4 + $0x1], 1 }
 0x342   :  { %725 = vsyncpa [#allocation7], 1 }
 0x343   :  { %727 = vsyncpa [#allocation7 + $0x1], 1 }
 0x344   :  { %728 = vsyncpa [#allocation5], 1 }
 0x345   :  { %730 = vsyncpa [#allocation5 + $0x1], 1 }

</bundles_post_ra>
